<compile_context>
chip_gen: v6e
topology: v6e:2x2x1
jax: 0.10.0
libtpu: 0.0.40
codegen_flags: <defaults>
</compile_context>

<pallas_src>
import functools

import jax
import jax.numpy as jnp
from jax.experimental import pallas as pl
from jax.experimental.pallas import tpu as pltpu

# Whole-array-in-VMEM BlockSpec (tiny shapes -> single grid point, full blocks).
VMEM_SPEC = functools.partial(pl.BlockSpec, memory_space=pltpu.MemorySpace.VMEM)
SMEM_SPEC = functools.partial(pl.BlockSpec, memory_space=pltpu.MemorySpace.SMEM)

NEG_SLOPE = 0.01  # torch.nn.LeakyReLU default


# ----------------------------------------------------------------------------
# Kernel A: fused feature extractor + ARD RBF Gram matrix over the concatenated
#           train+test batch.
#   f   = MLP(x_all)                                  (N, D_out)
#   z   = f * inv_ls                                  (ARD scaling, multiply not divide)
#   K   = sv * exp(-0.5 * ||z_i - z_j||^2)            (N, N)
# ----------------------------------------------------------------------------
def _features_gram_kernel(x_ref, w1_ref, b1_ref, w2_ref, b2_ref, w3_ref, b3_ref,
                          inv_ls_ref, sv_ref, k_ref):
    h = jnp.dot(x_ref[...], w1_ref[...], preferred_element_type=jnp.float32) + b1_ref[...]
    h = jnp.where(h >= 0.0, h, NEG_SLOPE * h)
    h = jnp.dot(h, w2_ref[...], preferred_element_type=jnp.float32) + b2_ref[...]
    h = jnp.where(h >= 0.0, h, NEG_SLOPE * h)
    f = jnp.dot(h, w3_ref[...], preferred_element_type=jnp.float32) + b3_ref[...]

    z = f * inv_ls_ref[...]                                 # (N, D_out)
    n_col = jnp.sum(z * z, axis=1, keepdims=True)           # (N, 1)
    cross = jax.lax.dot_general(
        z, z, (((1,), (1,)), ((), ())), preferred_element_type=jnp.float32
    )                                                       # (N, N) = z @ z^T
    # TODO(synk): n_col.T is a tiny sublane<->lane relayout; fine at N=24, would be
    # restructured (row-norms per output tile) in a tiled/large-N version.
    sqdist = jnp.maximum(n_col - 2.0 * cross + n_col.T, 0.0)
    k_ref[...] = sv_ref[0] * jnp.exp(-0.5 * sqdist)


def features_gram(x_all, mlp_params, inv_ls, sv):
    w1, b1, w2, b2, w3, b3 = mlp_params
    n = x_all.shape[0]
    return pl.pallas_call(
        _features_gram_kernel,
        out_shape=jax.ShapeDtypeStruct((n, n), jnp.float32),
        in_specs=[VMEM_SPEC() for _ in range(8)] + [SMEM_SPEC()],   # sv -> SMEM scalar
        out_specs=VMEM_SPEC(),
    )(x_all, w1, b1, w2, b2, w3, b3, inv_ls, sv)


# ----------------------------------------------------------------------------
# Kernel B: posterior combine (lane-dense (2, N_te) output)
#   mu_row  = alpha^T @ K_s                                   (1, N_te)
#   cov_row = colsum(K_ss) - rowsum(v)^T @ v + 1/beta         (1, N_te)
# (colsum(v^T v) == rowsum(v)^T @ v; avoids materializing the (N_te,N_te) matrix.)
# ----------------------------------------------------------------------------
def _posterior_kernel(alpha_row_ref, ks_ref, kss_ref, v_ref, beta_inv_ref, out_ref):
    ks = ks_ref[...]                                          # (N_tr, N_te)
    v = v_ref[...]                                            # (N_tr, N_te)

    mu_row = jnp.dot(alpha_row_ref[...], ks,
                     preferred_element_type=jnp.float32)      # (1, N_te)

    r_col = jnp.sum(v, axis=1, keepdims=True)                 # (N_tr, 1)  rowsums of v
    vtv_colsum = jax.lax.dot_general(
        r_col, v, (((0,), (0,)), ((), ())), preferred_element_type=jnp.float32
    )                                                         # (1, N_te)
    kss_colsum = jnp.sum(kss_ref[...], axis=0, keepdims=True) # (1, N_te)

    cov_row = kss_colsum - vtv_colsum + beta_inv_ref[0]
    out_ref[0:1, :] = mu_row
    out_ref[1:2, :] = cov_row


def posterior(alpha_row, k_s, k_ss, v, beta_inv):
    n_te = k_ss.shape[0]
    return pl.pallas_call(
        _posterior_kernel,
        out_shape=jax.ShapeDtypeStruct((2, n_te), jnp.float32),
        in_specs=[VMEM_SPEC(), VMEM_SPEC(), VMEM_SPEC(), VMEM_SPEC(), SMEM_SPEC()],
        out_specs=VMEM_SPEC(),
    )(alpha_row, k_s, k_ss, v, beta_inv)


# ----------------------------------------------------------------------------
# deepkernelGP forward
# ----------------------------------------------------------------------------
@jax.jit
def deep_kernel_gp_forward(params, x_train, y_train, x_test):
    mlp_params, length_scales, signal_variance, log_beta = params
    n_tr = x_train.shape[0]

    # One fused pre-Cholesky kernel over the concatenated batch.
    x_all = jnp.concatenate([x_train, x_test], axis=0)          # (N_tr+N_te, D_in)
    inv_ls = 1.0 / length_scales                                # (1, D_out) reciprocal length scales
    sv = signal_variance.reshape(-1)                            # (1,)  SMEM scalar
    beta_inv = jnp.exp(-log_beta)                               # (1,)  == exp(log_beta) ** -1

    k_all = features_gram(x_all, mlp_params, inv_ls, sv)        # (N, N)
    k_tt = k_all[:n_tr, :n_tr]                                  # (N_tr, N_tr)
    k_s = k_all[:n_tr, n_tr:]                                   # (N_tr, N_te)
    k_ss = k_all[n_tr:, n_tr:]                                  # (N_te, N_te)

    K = k_tt + beta_inv[0] * jnp.eye(n_tr, dtype=jnp.float32)

    # TODO(synk): Cholesky / triangular solves have no clean Pallas equivalent; kept in plain JAX.
    L = jnp.linalg.cholesky(K)
    alpha = jax.scipy.linalg.cho_solve((L, True), y_train)      # K^{-1} y   (N_tr, 1)
    v = jax.scipy.linalg.solve_triangular(L, k_s, lower=True)   # L^{-1} K_s (N_tr, N_te)

    # One fused post-Cholesky kernel; lane-dense (2, N_te) output, reshaped here.
    out = posterior(alpha.reshape(1, -1), k_s, k_ss, v, beta_inv)
    mu = out[0].reshape(-1, 1)                                  # (N_te, 1)
    cov = out[1].reshape(-1, 1)                                 # (N_te, 1)
    return mu, cov


# ----------------------------------------------------------------------------
# Deterministic parameter init (shapes follow the module's __init__)
# ----------------------------------------------------------------------------
def init_params(input_dim, key):
    layer_structure = [input_dim, input_dim * 10, input_dim * 5, input_dim]
    keys = jax.random.split(key, 2 * (len(layer_structure) - 1))
    mlp = []
    for i in range(len(layer_structure) - 1):
        fan_in, fan_out = layer_structure[i], layer_structure[i + 1]
        bound = 1.0 / (fan_in ** 0.5)
        w = jax.random.uniform(keys[2 * i], (fan_in, fan_out),
                               minval=-bound, maxval=bound, dtype=jnp.float32)
        b = jax.random.uniform(keys[2 * i + 1], (1, fan_out),
                               minval=-bound, maxval=bound, dtype=jnp.float32)
        mlp += [w, b]
    length_scales = jnp.ones((1, layer_structure[-1]), jnp.float32)   # ARD length scales
    signal_variance = jnp.ones((1, 1), jnp.float32)                   # ARD signal variance
    log_beta = jnp.zeros((1,), jnp.float32)                           # noise: log_beta = 0
    return (tuple(mlp), length_scales, signal_variance, log_beta)


if __name__ == "__main__":
    input_dim = 8
    n_train, n_test = 16, 8

    key = jax.random.PRNGKey(0)
    k_xtr, k_xte = jax.random.split(key, 2)

    x_train = jax.random.normal(k_xtr, (n_train, input_dim), dtype=jnp.float32)
    x_test = jax.random.normal(k_xte, (n_test, input_dim), dtype=jnp.float32)
    y_train = jnp.sin(x_train[:, :1]) + 0.1 * x_train[:, 1:2]          # (N_tr, 1)

    params = init_params(input_dim, jax.random.PRNGKey(42))

    mu, cov = deep_kernel_gp_forward(params, x_train, y_train, x_test)
    mu, cov = jax.block_until_ready((mu, cov))

    assert mu.shape == (n_test, 1) and cov.shape == (n_test, 1)
    assert bool(jnp.all(jnp.isfinite(mu))) and bool(jnp.all(jnp.isfinite(cov)))
    print("KERNEL_OK")
</pallas_src>

<mosaic_0001>
module attributes {stable_mosaic.version = 11 : i64} {
  func.func @_features_gram_kernel(%arg0: memref<24x8xf32, #tpu.memory_space<vmem>>, %arg1: memref<8x80xf32, #tpu.memory_space<vmem>>, %arg2: memref<1x80xf32, #tpu.memory_space<vmem>>, %arg3: memref<80x40xf32, #tpu.memory_space<vmem>>, %arg4: memref<1x40xf32, #tpu.memory_space<vmem>>, %arg5: memref<40x8xf32, #tpu.memory_space<vmem>>, %arg6: memref<1x8xf32, #tpu.memory_space<vmem>>, %arg7: memref<1x8xf32, #tpu.memory_space<vmem>>, %arg8: memref<1xf32, #tpu.memory_space<smem>>, %arg9: memref<24x24xf32, #tpu.memory_space<vmem>>) attributes {dimension_semantics = [], scalar_prefetch = 0 : i64, scratch_operands = 0 : i64, tpu.core_type = #tpu.core_type<tc>} {
    %c0 = arith.constant 0 : index
    %c0_0 = arith.constant 0 : index
    %0 = vector.load %arg0[%c0, %c0_0] : memref<24x8xf32, #tpu.memory_space<vmem>>, vector<24x8xf32>
    %c0_1 = arith.constant 0 : index
    %c0_2 = arith.constant 0 : index
    %1 = vector.load %arg1[%c0_1, %c0_2] : memref<8x80xf32, #tpu.memory_space<vmem>>, vector<8x80xf32>
    %cst = arith.constant dense<0.000000e+00> : vector<24x80xf32>
    %2 = tpu.matmul %0, %1, %cst {dimension_numbers = #tpu.dot_dimension_numbers<[1], [0], [0], [1], [0, 0, 1, 1], [], []>} : vector<24x8xf32>, vector<8x80xf32>, vector<24x80xf32> -> vector<24x80xf32>
    %c0_3 = arith.constant 0 : index
    %c0_4 = arith.constant 0 : index
    %3 = vector.load %arg2[%c0_3, %c0_4] : memref<1x80xf32, #tpu.memory_space<vmem>>, vector<1x80xf32>
    %4 = vector.broadcast %3 : vector<1x80xf32> to vector<24x80xf32>
    %5 = arith.addf %2, %4 : vector<24x80xf32>
    %cst_5 = arith.constant 0.000000e+00 : f32
    %6 = vector.broadcast %cst_5 : f32 to vector<24x80xf32>
    %7 = arith.cmpf oge, %5, %6 : vector<24x80xf32>
    %cst_6 = arith.constant 0.00999999977 : f32
    %8 = vector.broadcast %cst_6 : f32 to vector<24x80xf32>
    %9 = arith.mulf %8, %5 : vector<24x80xf32>
    %10 = arith.select %7, %5, %9 : vector<24x80xi1>, vector<24x80xf32>
    %c0_7 = arith.constant 0 : index
    %c0_8 = arith.constant 0 : index
    %11 = vector.load %arg3[%c0_7, %c0_8] : memref<80x40xf32, #tpu.memory_space<vmem>>, vector<80x40xf32>
    %cst_9 = arith.constant dense<0.000000e+00> : vector<24x40xf32>
    %12 = tpu.matmul %10, %11, %cst_9 {dimension_numbers = #tpu.dot_dimension_numbers<[1], [0], [0], [1], [0, 0, 1, 1], [], []>} : vector<24x80xf32>, vector<80x40xf32>, vector<24x40xf32> -> vector<24x40xf32>
    %c0_10 = arith.constant 0 : index
    %c0_11 = arith.constant 0 : index
    %13 = vector.load %arg4[%c0_10, %c0_11] : memref<1x40xf32, #tpu.memory_space<vmem>>, vector<1x40xf32>
    %14 = vector.broadcast %13 : vector<1x40xf32> to vector<24x40xf32>
    %15 = arith.addf %12, %14 : vector<24x40xf32>
    %cst_12 = arith.constant 0.000000e+00 : f32
    %16 = vector.broadcast %cst_12 : f32 to vector<24x40xf32>
    %17 = arith.cmpf oge, %15, %16 : vector<24x40xf32>
    %cst_13 = arith.constant 0.00999999977 : f32
    %18 = vector.broadcast %cst_13 : f32 to vector<24x40xf32>
    %19 = arith.mulf %18, %15 : vector<24x40xf32>
    %20 = arith.select %17, %15, %19 : vector<24x40xi1>, vector<24x40xf32>
    %c0_14 = arith.constant 0 : index
    %c0_15 = arith.constant 0 : index
    %21 = vector.load %arg5[%c0_14, %c0_15] : memref<40x8xf32, #tpu.memory_space<vmem>>, vector<40x8xf32>
    %cst_16 = arith.constant dense<0.000000e+00> : vector<24x8xf32>
    %22 = tpu.matmul %20, %21, %cst_16 {dimension_numbers = #tpu.dot_dimension_numbers<[1], [0], [0], [1], [0, 0, 1, 1], [], []>} : vector<24x40xf32>, vector<40x8xf32>, vector<24x8xf32> -> vector<24x8xf32>
    %c0_17 = arith.constant 0 : index
    %c0_18 = arith.constant 0 : index
    %23 = vector.load %arg6[%c0_17, %c0_18] : memref<1x8xf32, #tpu.memory_space<vmem>>, vector<1x8xf32>
    %24 = vector.broadcast %23 : vector<1x8xf32> to vector<24x8xf32>
    %25 = arith.addf %22, %24 : vector<24x8xf32>
    %c0_19 = arith.constant 0 : index
    %c0_20 = arith.constant 0 : index
    %26 = vector.load %arg7[%c0_19, %c0_20] : memref<1x8xf32, #tpu.memory_space<vmem>>, vector<1x8xf32>
    %27 = vector.broadcast %26 : vector<1x8xf32> to vector<24x8xf32>
    %28 = arith.mulf %25, %27 : vector<24x8xf32>
    %29 = arith.mulf %28, %28 : vector<24x8xf32>
    %cst_21 = arith.constant dense<0.000000e+00> : vector<24xf32>
    %30 = vector.multi_reduction <add>, %29, %cst_21 [1] : vector<24x8xf32> to vector<24xf32>
    %31 = vector.shape_cast %30 : vector<24xf32> to vector<24x1xf32>
    %cst_22 = arith.constant dense<0.000000e+00> : vector<24x24xf32>
    %32 = tpu.matmul %28, %28, %cst_22 {dimension_numbers = #tpu.dot_dimension_numbers<[1], [1], [0], [0], [0, 0, 1, 0], [], []>} : vector<24x8xf32>, vector<24x8xf32>, vector<24x24xf32> -> vector<24x24xf32>
    %cst_23 = arith.constant 2.000000e+00 : f32
    %33 = vector.broadcast %cst_23 : f32 to vector<24x24xf32>
    %34 = arith.mulf %33, %32 : vector<24x24xf32>
    %35 = vector.broadcast %31 : vector<24x1xf32> to vector<24x24xf32>
    %36 = arith.subf %35, %34 : vector<24x24xf32>
    %37 = tpu.transpose %31, [1, 0] : vector<24x1xf32> -> vector<1x24xf32>
    %38 = vector.broadcast %37 : vector<1x24xf32> to vector<24x24xf32>
    %39 = arith.addf %36, %38 : vector<24x24xf32>
    %cst_24 = arith.constant 0.000000e+00 : f32
    %40 = vector.broadcast %cst_24 : f32 to vector<24x24xf32>
    %41 = arith.maximumf %39, %40 : vector<24x24xf32>
    %c0_25 = arith.constant 0 : index
    %42 = memref.load %arg8[%c0_25] : memref<1xf32, #tpu.memory_space<smem>>
    %cst_26 = arith.constant -5.000000e-01 : f32
    %43 = vector.broadcast %cst_26 : f32 to vector<24x24xf32>
    %44 = arith.mulf %43, %41 : vector<24x24xf32>
    %45 = math.exp %44 : vector<24x24xf32>
    %46 = vector.broadcast %42 : f32 to vector<24x24xf32>
    %47 = arith.mulf %46, %45 : vector<24x24xf32>
    %c0_27 = arith.constant 0 : index
    %c0_28 = arith.constant 0 : index
    %48 = vector.load %arg9[%c0_27, %c0_28] : memref<24x24xf32, #tpu.memory_space<vmem>>, vector<24x24xf32>
    tpu.vector_store %arg9[%c0_27, %c0_28], %47 {strides = array<i32>} : memref<24x24xf32, #tpu.memory_space<vmem>>, vector<24x24xf32>,
    return
  }
}

module attributes {stable_mosaic.version = 11 : i64} {
  func.func @_posterior_kernel(%arg0: memref<1x16xf32, #tpu.memory_space<vmem>>, %arg1: memref<16x8xf32, #tpu.memory_space<vmem>>, %arg2: memref<8x8xf32, #tpu.memory_space<vmem>>, %arg3: memref<16x8xf32, #tpu.memory_space<vmem>>, %arg4: memref<1xf32, #tpu.memory_space<smem>>, %arg5: memref<2x8xf32, #tpu.memory_space<vmem>>) attributes {dimension_semantics = [], scalar_prefetch = 0 : i64, scratch_operands = 0 : i64, tpu.core_type = #tpu.core_type<tc>} {
    %c0 = arith.constant 0 : index
    %c0_0 = arith.constant 0 : index
    %0 = vector.load %arg1[%c0, %c0_0] : memref<16x8xf32, #tpu.memory_space<vmem>>, vector<16x8xf32>
    %c0_1 = arith.constant 0 : index
    %c0_2 = arith.constant 0 : index
    %1 = vector.load %arg3[%c0_1, %c0_2] : memref<16x8xf32, #tpu.memory_space<vmem>>, vector<16x8xf32>
    %c0_3 = arith.constant 0 : index
    %c0_4 = arith.constant 0 : index
    %2 = vector.load %arg0[%c0_3, %c0_4] : memref<1x16xf32, #tpu.memory_space<vmem>>, vector<1x16xf32>
    %cst = arith.constant dense<0.000000e+00> : vector<1x8xf32>
    %3 = tpu.matmul %2, %0, %cst {dimension_numbers = #tpu.dot_dimension_numbers<[1], [0], [0], [1], [0, 0, 1, 1], [], []>} : vector<1x16xf32>, vector<16x8xf32>, vector<1x8xf32> -> vector<1x8xf32>
    %cst_5 = arith.constant dense<0.000000e+00> : vector<16xf32>
    %4 = vector.multi_reduction <add>, %1, %cst_5 [1] : vector<16x8xf32> to vector<16xf32>
    %5 = vector.shape_cast %4 : vector<16xf32> to vector<16x1xf32>
    %cst_6 = arith.constant dense<0.000000e+00> : vector<1x8xf32>
    %6 = tpu.matmul %5, %1, %cst_6 {dimension_numbers = #tpu.dot_dimension_numbers<[0], [0], [1], [1], [0, 1, 1, 1], [], []>} : vector<16x1xf32>, vector<16x8xf32>, vector<1x8xf32> -> vector<1x8xf32>
    %c0_7 = arith.constant 0 : index
    %c0_8 = arith.constant 0 : index
    %7 = vector.load %arg2[%c0_7, %c0_8] : memref<8x8xf32, #tpu.memory_space<vmem>>, vector<8x8xf32>
    %cst_9 = arith.constant dense<0.000000e+00> : vector<8xf32>
    %8 = vector.multi_reduction <add>, %7, %cst_9 [0] : vector<8x8xf32> to vector<8xf32>
    %9 = vector.shape_cast %8 : vector<8xf32> to vector<1x8xf32>
    %10 = arith.subf %9, %6 : vector<1x8xf32>
    %c0_10 = arith.constant 0 : index
    %11 = memref.load %arg4[%c0_10] : memref<1xf32, #tpu.memory_space<smem>>
    %12 = vector.broadcast %11 : f32 to vector<1x8xf32>
    %13 = arith.addf %10, %12 : vector<1x8xf32>
    %c0_11 = arith.constant 0 : index
    %c0_12 = arith.constant 0 : index
    %14 = vector.load %arg5[%c0_11, %c0_12] : memref<2x8xf32, #tpu.memory_space<vmem>>, vector<1x8xf32>
    tpu.vector_store %arg5[%c0_11, %c0_12], %3 {strides = array<i32>} : memref<2x8xf32, #tpu.memory_space<vmem>>, vector<1x8xf32>,
    %c1 = arith.constant 1 : index
    %c0_13 = arith.constant 0 : index
    %15 = vector.load %arg5[%c1, %c0_13] : memref<2x8xf32, #tpu.memory_space<vmem>>, vector<1x8xf32>
    tpu.vector_store %arg5[%c1, %c0_13], %13 {strides = array<i32>} : memref<2x8xf32, #tpu.memory_space<vmem>>, vector<1x8xf32>,
    return
  }
}

</mosaic_0001>

<bundles_post_ra>
// kernel: custom-call.8
= control target key start
LH: loop header
LB: loop body
LE: loop exit
PB: predicated region body
PF: predicated region fallthrough
CT: control target
= control target key end

     0   :  { %v594_v0 = vmov 0.0   ;;  %vm42_vm0 = vcmask 7168   ;;  %vm73_vm1 = vcmask 15368   ;;  %vm90_vm2 = vcmask 1047553   ;;  %s690_s0 = inlined_call_operand.vmem [shape: f32[16,16], index: 0, kind: input, shape index: {}]   ;;  %s691_s1 = inlined_call_operand.vmem [shape: f32[16,16], index: 1, kind: output, shape index: {}]  }
   0x1   :  { %39 = vst [vmem:[#allocation1] sm:$0xff] %v594_v0  ;;  %v608_v4 = vld [vmem:[%s690_s0] sm:$0xff]  ;;  %v616_v16 = vld [vmem:[%s690_s0 + $0x8] sm:$0xff]  ;;  %vm91_vm3 = vmand %vm73_vm1, %vm90_vm2  ;;  %vm108_vm4 = vcmask 23568   ;;  %vm125_vm5 = vcmask 1047554   ;;  %vm143_vm7 = vcmask 31768  }
   0x2   :  { %33 = vst [vmem:[#allocation0] sm:$0xff] %v608_v4  ;;  %35 = vst [vmem:[#allocation0 + $0x8] sm:$0xff] %v616_v16  ;;  %vm160_vm8 = vcmask 1047555   ;;  %vm178_vm10 = vcmask 39968   ;;  %vm195_vm11 = vcmask 1047556   ;;  %vm213_vm13 = vcmask 48168  }
   0x3   :  { %vm126_vm6 = vmand %vm108_vm4, %vm125_vm5  ;;  %vm230_vm14 = vcmask 1047557  }
   0x4   :  { %vm161_vm9 = vmand %vm143_vm7, %vm160_vm8 }
   0x5   :  { %vm196_vm12 = vmand %vm178_vm10, %vm195_vm11 }
   0x6   :  { %vm231_vm15 = vmand %vm213_vm13, %vm230_vm14 }
   0x8   :  { %v43_v1 = vld [vmem:[#allocation1] ss:$0 sm:$0xff] }
   0x9   :  { %v45_v2 = vmul.f32 %v43_v1, %v43_v1  ;;  %v52_v3 = vmul.f32 0.0, %v43_v1  ;;  %v44_v5 = vld [vmem:[#allocation0] ss:$0 sm:$0xff]  ;;  %v77_v17 = vld [vmem:[#allocation0 + $0x1] ss:$0 sm:$0xff] }
   0xa   :  { %v112_v40 = vld [vmem:[#allocation0 + $0x2] ss:$0 sm:$0xff]  ;;  %v147_v58 = vld [vmem:[#allocation0 + $0x3] ss:$0 sm:$0xff] }
   0xb   :  { %46 = vadd.xlane.f32.xlu0 %v45_v2 }
   0xf   :  { %53 = vadd.xlane.f32.xlu0 %v52_v3 }
  0x94   :  { %v47_v6 = vpop.xlane.xlu0 %46 }
  0x95   :  { %v48_v7 = vsub.f32 %v44_v5, %v47_v6 }
  0x97   :  { %562 = vrsqrt.f32 %v48_v7 }
  0x98   :  { %v54_v8 = vpop.xlane.xlu0 %53 }
  0x99   :  { %v55_v9 = vsub.f32 %v608_v4, %v54_v8 }
  0xa4   :  { %v563_v10 = vpop.eup %562 }
  0xa5   :  { %v56_v11 = vmul.f32 %v563_v10, %v55_v9 }
  0xa7   :  { %v57_v12 = vsel %vm42_vm0, %v56_v11, 0.0 }
  0xa8   :  { %59 = vst [vmem:[#allocation1] sm:$0xff] %v57_v12 }
  0xaf   :  { %v75_v13 = vld [vmem:[#allocation1 + $0x1] ss:$0 sm:$0xff] }
  0xb0   :  { %v85_v14 = vmul.f32 %v75_v13, %v57_v12  ;;  %v78_v15 = vmul.f32 %v75_v13, %v75_v13 }
  0xb2   :  { %86 = vadd.xlane.f32.xlu0 %v85_v14  ;;  %79 = vadd.xlane.f32.xlu1 %v78_v15 }
  0xb6   :  { %65 = vadd.xlane.f32.xlu1 %v52_v3 }
 0x13b   :  { %v80_v18 = vpop.xlane.xlu1 %79  ;;  %v87_v24 = vpop.xlane.xlu0 %86 }
 0x13c   :  { %v81_v19 = vsub.f32 %v77_v17, %v80_v18  ;;  %v88_v26 = vsub.f32 %v608_v4, %v87_v24 }
 0x13e   :  { %564 = vrsqrt.f32 %v81_v19 }
 0x13f   :  { %v66_v20 = vpop.xlane.xlu1 %65 }
 0x140   :  { %v67_v21 = vsub.f32 %v616_v16, %v66_v20 }
 0x142   :  { %v68_v22 = vmul.f32 %v563_v10, %v67_v21 }
 0x144   :  { %v69_v23 = vsel %vm42_vm0, %v68_v22, 0.0  ;;  %vm248_vm0 = vcmask 56368  }
 0x145   :  { %v99_v25 = vmul.f32 %v75_v13, %v69_v23  ;;  %v182_v13 = vld [vmem:[#allocation0 + $0x4] ss:$0 sm:$0xff] }
 0x147   :  { %100 = vadd.xlane.f32.xlu1 %v99_v25 }
 0x14b   :  { %v565_v27 = vpop.eup %564 }
 0x14c   :  { %v89_v28 = vmul.f32 %v565_v27, %v88_v26 }
 0x14e   :  { %v92_v29 = vsel %vm91_vm3, %v89_v28, 0.0 }
 0x14f   :  { %v93_v30 = vadd.f32 %v92_v29, %v57_v12 }
 0x151   :  { %94 = vst [vmem:[#allocation1] sm:$0xff] %v93_v30 }
 0x158   :  { %v110_v31 = vld [vmem:[#allocation1 + $0x2] ss:$0 sm:$0xff] }
 0x159   :  { %v113_v32 = vmul.f32 %v110_v31, %v110_v31  ;;  %v120_v33 = vmul.f32 %v110_v31, %v93_v30 }
 0x15b   :  { %114 = vadd.xlane.f32.xlu0 %v113_v32  ;;  %121 = vadd.xlane.f32.xlu1 %v120_v33  ;;  %v217_v32 = vld [vmem:[#allocation0 + $0x5] ss:$0 sm:$0xff] }
 0x1d0   :  { %v101_v34 = vpop.xlane.xlu1 %100 }
 0x1d1   :  { %v102_v35 = vsub.f32 %v616_v16, %v101_v34 }
 0x1d3   :  { %v103_v36 = vmul.f32 %v565_v27, %v102_v35 }
 0x1d5   :  { %v104_v37 = vsel %vm73_vm1, %v103_v36, 0.0  ;;  %vm265_vm1 = vcmask 1047558  }
 0x1d6   :  { %v105_v38 = vadd.f32 %v104_v37, %v69_v23  ;;  %vm266_vm3 = vmand %vm248_vm0, %vm265_vm1 }
 0x1d8   :  { %v134_v39 = vmul.f32 %v110_v31, %v105_v38 }
 0x1da   :  { %135 = vadd.xlane.f32.xlu0 %v134_v39 }
 0x1e4   :  { %v115_v41 = vpop.xlane.xlu0 %114  ;;  %v122_v43 = vpop.xlane.xlu1 %121 }
 0x1e5   :  { %v116_v42 = vsub.f32 %v112_v40, %v115_v41  ;;  %v123_v44 = vsub.f32 %v608_v4, %v122_v43 }
 0x1e7   :  { %566 = vrsqrt.f32 %v116_v42 }
 0x1f4   :  { %v567_v45 = vpop.eup %566 }
 0x1f5   :  { %v124_v46 = vmul.f32 %v567_v45, %v123_v44 }
 0x1f7   :  { %v127_v47 = vsel %vm126_vm6, %v124_v46, 0.0  ;;  %vm318_vm6 = vcmask 72768  }
 0x1f8   :  { %v128_v48 = vadd.f32 %v127_v47, %v93_v30 }
 0x1fa   :  { %129 = vst [vmem:[#allocation1] sm:$0xff] %v128_v48 }
 0x201   :  { %v145_v49 = vld [vmem:[#allocation1 + $0x3] ss:$0 sm:$0xff] }
 0x202   :  { %v155_v50 = vmul.f32 %v145_v49, %v128_v48  ;;  %v148_v51 = vmul.f32 %v145_v49, %v145_v49 }
 0x204   :  { %156 = vadd.xlane.f32.xlu0 %v155_v50  ;;  %149 = vadd.xlane.f32.xlu1 %v148_v51  ;;  %v252_v50 = vld [vmem:[#allocation0 + $0x6] ss:$0 sm:$0xff] }
 0x263   :  { %v136_v52 = vpop.xlane.xlu0 %135 }
 0x264   :  { %v137_v53 = vsub.f32 %v616_v16, %v136_v52 }
 0x266   :  { %v138_v54 = vmul.f32 %v567_v45, %v137_v53 }
 0x268   :  { %v139_v55 = vsel %vm108_vm4, %v138_v54, 0.0  ;;  %vm283_vm4 = vcmask 64568  }
 0x269   :  { %v140_v56 = vadd.f32 %v139_v55, %v105_v38 }
 0x26b   :  { %v169_v57 = vmul.f32 %v145_v49, %v140_v56 }
 0x26d   :  { %170 = vadd.xlane.f32.xlu1 %v169_v57 }
 0x28d   :  { %v150_v59 = vpop.xlane.xlu1 %149  ;;  %v157_v61 = vpop.xlane.xlu0 %156 }
 0x28e   :  { %v151_v60 = vsub.f32 %v147_v58, %v150_v59  ;;  %v158_v62 = vsub.f32 %v608_v4, %v157_v61 }
 0x290   :  { %568 = vrsqrt.f32 %v151_v60 }
 0x29d   :  { %v569_v63 = vpop.eup %568 }
 0x29e   :  { %v159_v0 = vmul.f32 %v569_v63, %v158_v62 }
 0x2a0   :  { %v162_v1 = vsel %vm161_vm9, %v159_v0, 0.0 }
 0x2a1   :  { %v163_v2 = vadd.f32 %v162_v1, %v128_v48 }
 0x2a3   :  { %164 = vst [vmem:[#allocation1] sm:$0xff] %v163_v2 }
 0x2aa   :  { %v180_v3 = vld [vmem:[#allocation1 + $0x4] ss:$0 sm:$0xff] }
 0x2ab   :  { %v190_v5 = vmul.f32 %v180_v3, %v163_v2  ;;  %v183_v6 = vmul.f32 %v180_v3, %v180_v3 }
 0x2ad   :  { %191 = vadd.xlane.f32.xlu1 %v190_v5  ;;  %184 = vadd.xlane.f32.xlu0 %v183_v6 }
 0x2f6   :  { %v171_v7 = vpop.xlane.xlu1 %170 }
 0x2f7   :  { %v172_v8 = vsub.f32 %v616_v16, %v171_v7 }
 0x2f9   :  { %v173_v9 = vmul.f32 %v569_v63, %v172_v8 }
 0x2fb   :  { %v174_v10 = vsel %vm143_vm7, %v173_v9, 0.0  ;;  %vm341_vm7 = vcmask 80968  }
 0x2fc   :  { %v175_v11 = vadd.f32 %v174_v10, %v140_v56  ;;  %vm361_vm9 = vmand %vm341_vm7, %vm90_vm2 }
 0x2fe   :  { %v204_v12 = vmul.f32 %v180_v3, %v175_v11  ;;  %v287_v3 = vld [vmem:[#allocation0 + $0x7] ss:$0 sm:$0xff] }
 0x300   :  { %205 = vadd.xlane.f32.xlu0 %v204_v12 }
 0x336   :  { %v185_v14 = vpop.xlane.xlu0 %184  ;;  %v192_v17 = vpop.xlane.xlu1 %191 }
 0x337   :  { %v186_v15 = vsub.f32 %v182_v13, %v185_v14  ;;  %v193_v18 = vsub.f32 %v608_v4, %v192_v17  ;;  %v322_v17 = vld [vmem:[#allocation0 + $0x8] ss:$0 sm:$0xff] }
 0x339   :  { %570 = vrsqrt.f32 %v186_v15 }
 0x346   :  { %v571_v19 = vpop.eup %570 }
 0x347   :  { %v194_v20 = vmul.f32 %v571_v19, %v193_v18 }
 0x349   :  { %v197_v21 = vsel %vm196_vm12, %v194_v20, 0.0  ;;  %vm391_vm12 = vcmask 97368  }
 0x34a   :  { %v198_v22 = vadd.f32 %v197_v21, %v163_v2 }
 0x34c   :  { %199 = vst [vmem:[#allocation1] sm:$0xff] %v198_v22 }
 0x353   :  { %v215_v23 = vld [vmem:[#allocation1 + $0x5] ss:$0 sm:$0xff] }
 0x354   :  { %v225_v24 = vmul.f32 %v215_v23, %v198_v22  ;;  %v218_v25 = vmul.f32 %v215_v23, %v215_v23 }
 0x356   :  { %226 = vadd.xlane.f32.xlu0 %v225_v24  ;;  %219 = vadd.xlane.f32.xlu1 %v218_v25 }
 0x389   :  { %v206_v26 = vpop.xlane.xlu0 %205 }
 0x38a   :  { %v207_v27 = vsub.f32 %v616_v16, %v206_v26 }
 0x38c   :  { %v208_v28 = vmul.f32 %v571_v19, %v207_v27 }
 0x38e   :  { %v209_v29 = vsel %vm178_vm10, %v208_v28, 0.0  ;;  %vm366_vm10 = vcmask 89168  }
 0x38f   :  { %v210_v30 = vadd.f32 %v209_v29, %v175_v11  ;;  %v345_v29 = vld [vmem:[#allocation0 + $0x9] ss:$0 sm:$0xff]  ;;  %vm386_vm2 = vmand %vm366_vm10, %vm125_vm5 }
 0x390   :  { %vm411_vm5 = vmand %vm391_vm12, %vm160_vm8 }
 0x391   :  { %v239_v31 = vmul.f32 %v215_v23, %v210_v30 }
 0x393   :  { %240 = vadd.xlane.f32.xlu1 %v239_v31 }
 0x3df   :  { %v220_v33 = vpop.xlane.xlu1 %219  ;;  %v227_v35 = vpop.xlane.xlu0 %226 }
 0x3e0   :  { %v221_v34 = vsub.f32 %v217_v32, %v220_v33  ;;  %v228_v36 = vsub.f32 %v608_v4, %v227_v35 }
 0x3e2   :  { %572 = vrsqrt.f32 %v221_v34 }
 0x3ef   :  { %v573_v37 = vpop.eup %572 }
 0x3f0   :  { %v229_v38 = vmul.f32 %v573_v37, %v228_v36 }
 0x3f2   :  { %v232_v39 = vsel %vm231_vm15, %v229_v38, 0.0  ;;  %vm441_vm15 = vcmask 113768  }
 0x3f3   :  { %v233_v40 = vadd.f32 %v232_v39, %v198_v22 }
 0x3f5   :  { %234 = vst [vmem:[#allocation1] sm:$0xff] %v233_v40 }
 0x3fc   :  { %v250_v41 = vld [vmem:[#allocation1 + $0x6] ss:$0 sm:$0xff] }
 0x3fd   :  { %v260_v42 = vmul.f32 %v250_v41, %v233_v40  ;;  %v253_v43 = vmul.f32 %v250_v41, %v250_v41 }
 0x3ff   :  { %261 = vadd.xlane.f32.xlu1 %v260_v42  ;;  %254 = vadd.xlane.f32.xlu0 %v253_v43 }
 0x41c   :  { %v241_v44 = vpop.xlane.xlu1 %240 }
 0x41d   :  { %v242_v45 = vsub.f32 %v616_v16, %v241_v44 }
 0x41f   :  { %v243_v46 = vmul.f32 %v573_v37, %v242_v45 }
 0x421   :  { %v244_v47 = vsel %vm213_vm13, %v243_v46, 0.0  ;;  %vm416_vm13 = vcmask 105568  }
 0x422   :  { %v245_v48 = vadd.f32 %v244_v47, %v210_v30  ;;  %vm436_vm8 = vmand %vm416_vm13, %vm195_vm11 }
 0x423   :  { %vm461_vm11 = vmand %vm441_vm15, %vm230_vm14 }
 0x424   :  { %v274_v49 = vmul.f32 %v250_v41, %v245_v48  ;;  %v370_v41 = vld [vmem:[#allocation0 + $0xa] ss:$0 sm:$0xff] }
 0x426   :  { %275 = vadd.xlane.f32.xlu0 %v274_v49 }
 0x488   :  { %v255_v51 = vpop.xlane.xlu0 %254  ;;  %v262_v53 = vpop.xlane.xlu1 %261 }
 0x489   :  { %v256_v52 = vsub.f32 %v252_v50, %v255_v51  ;;  %v263_v54 = vsub.f32 %v608_v4, %v262_v53  ;;  %v395_v53 = vld [vmem:[#allocation0 + $0xb] ss:$0 sm:$0xff] }
 0x48b   :  { %574 = vrsqrt.f32 %v256_v52 }
 0x498   :  { %v575_v55 = vpop.eup %574 }
 0x499   :  { %v264_v56 = vmul.f32 %v575_v55, %v263_v54 }
 0x49b   :  { %v267_v57 = vsel %vm266_vm3, %v264_v56, 0.0  ;;  %vm466_vm3 = vcmask 121968  }
 0x49c   :  { %v648_v58 = vadd.f32 %v267_v57, %v233_v40 }
 0x49e   :  { %269 = vst [vmem:[#allocation1] sm:$0xff] %v648_v58 }
 0x4a5   :  { %v651_v59 = vld [vmem:[#allocation1 + $0x7] ss:$0 sm:$0xff] }
 0x4a6   :  { %v288_v60 = vmul.f32 %v651_v59, %v651_v59 }
 0x4a8   :  { %289 = vadd.xlane.f32.xlu1 %v288_v60 }
 0x4af   :  { %v276_v61 = vpop.xlane.xlu0 %275 }
 0x4b0   :  { %v277_v62 = vsub.f32 %v616_v16, %v276_v61 }
 0x4b2   :  { %v278_v63 = vmul.f32 %v575_v55, %v277_v62 }
 0x4b4   :  { %v279_v0 = vsel %vm248_vm0, %v278_v63, 0.0  ;;  %vm300_vm0 = vcmask 1047559  }
 0x4b5   :  { %v280_v1 = vadd.f32 %v279_v0, %v245_v48  ;;  %vm301_vm14 = vmand %vm283_vm4, %vm300_vm0 }
 0x4b7   :  { %v309_v2 = vmul.f32 %v651_v59, %v280_v1 }
 0x4b9   :  { %310 = vadd.xlane.f32.xlu0 %v309_v2 }
 0x531   :  { %v290_v5 = vpop.xlane.xlu1 %289 }
 0x532   :  { %v291_v6 = vsub.f32 %v287_v3, %v290_v5  ;;  %v420_v3 = vld [vmem:[#allocation0 + $0xc] ss:$0 sm:$0xff] }
 0x534   :  { %576 = vrsqrt.f32 %v291_v6 }
 0x541   :  { %v658_v9 = vpop.eup %576 }
 0x542   :  { %v311_v7 = vpop.xlane.xlu0 %310 }
 0x543   :  { %v312_v8 = vsub.f32 %v616_v16, %v311_v7 }
 0x545   :  { %v313_v10 = vmul.f32 %v658_v9, %v312_v8 }
 0x547   :  { %v314_v11 = vsel %vm283_vm4, %v313_v10, 0.0  ;;  %vm491_vm4 = vcmask 130168  }
 0x548   :  { %v315_v12 = vadd.f32 %v314_v11, %v280_v1 }
 0x54a   :  { %317 = vst [vmem:[#allocation1 + $0x8] sm:$0xff] %v315_v12 }
 0x551   :  { %v320_v13 = vld [vmem:[#allocation1 + $0x8] ss:$0 sm:$0xff] }
 0x552   :  { %v332_v14 = vmul.f32 %v320_v13, %v315_v12  ;;  %v323_v15 = vmul.f32 %v320_v13, %v320_v13 }
 0x554   :  { %333 = vadd.xlane.f32.xlu0 %v332_v14  ;;  %324 = vadd.xlane.f32.xlu1 %v323_v15 }
 0x5dd   :  { %v325_v18 = vpop.xlane.xlu1 %324  ;;  %v334_v20 = vpop.xlane.xlu0 %333 }
 0x5de   :  { %v326_v19 = vsub.f32 %v322_v17, %v325_v18  ;;  %v335_v21 = vsub.f32 %v616_v16, %v334_v20  ;;  %v445_v18 = vld [vmem:[#allocation0 + $0xd] ss:$0 sm:$0xff] }
 0x5e0   :  { %578 = vrsqrt.f32 %v326_v19 }
 0x5ed   :  { %v579_v22 = vpop.eup %578 }
 0x5ee   :  { %v336_v23 = vmul.f32 %v579_v22, %v335_v21 }
 0x5f0   :  { %v337_v24 = vsel %vm318_vm6, %v336_v23, 0.0  ;;  %vm486_vm6 = vmand %vm466_vm3, %vm265_vm1 }
 0x5f1   :  { %v338_v25 = vadd.f32 %v337_v24, %v315_v12  ;;  %vm511_vm1 = vmand %vm491_vm4, %vm300_vm0 }
 0x5f3   :  { %340 = vst [vmem:[#allocation1 + $0x8] sm:$0xff] %v338_v25 }
 0x5fa   :  { %v343_v26 = vld [vmem:[#allocation1 + $0x9] ss:$0 sm:$0xff] }
 0x5fb   :  { %v355_v27 = vmul.f32 %v343_v26, %v338_v25  ;;  %v346_v28 = vmul.f32 %v343_v26, %v343_v26 }
 0x5fd   :  { %356 = vadd.xlane.f32.xlu0 %v355_v27  ;;  %347 = vadd.xlane.f32.xlu1 %v346_v28 }
 0x686   :  { %v348_v30 = vpop.xlane.xlu1 %347  ;;  %v357_v32 = vpop.xlane.xlu0 %356 }
 0x687   :  { %v349_v31 = vsub.f32 %v345_v29, %v348_v30  ;;  %v358_v33 = vsub.f32 %v616_v16, %v357_v32  ;;  %v295_v30 = vmul.f32 %v651_v59, %v648_v58 }
 0x689   :  { %580 = vrsqrt.f32 %v349_v31  ;;  %v470_v31 = vld [vmem:[#allocation0 + $0xe] ss:$0 sm:$0xff] }
 0x696   :  { %v581_v34 = vpop.eup %580 }
 0x697   :  { %v359_v35 = vmul.f32 %v581_v34, %v358_v33 }
 0x699   :  { %v362_v36 = vsel %vm361_vm9, %v359_v35, 0.0 }
 0x69a   :  { %v363_v37 = vadd.f32 %v362_v36, %v338_v25 }
 0x69c   :  { %365 = vst [vmem:[#allocation1 + $0x8] sm:$0xff] %v363_v37 }
 0x6a3   :  { %v368_v38 = vld [vmem:[#allocation1 + $0xa] ss:$0 sm:$0xff] }
 0x6a4   :  { %v380_v39 = vmul.f32 %v368_v38, %v363_v37  ;;  %v371_v40 = vmul.f32 %v368_v38, %v368_v38 }
 0x6a6   :  { %381 = vadd.xlane.f32.xlu0 %v380_v39  ;;  %372 = vadd.xlane.f32.xlu1 %v371_v40 }
 0x72f   :  { %v373_v42 = vpop.xlane.xlu1 %372  ;;  %v382_v44 = vpop.xlane.xlu0 %381 }
 0x730   :  { %v374_v43 = vsub.f32 %v370_v41, %v373_v42  ;;  %v383_v45 = vsub.f32 %v616_v16, %v382_v44 }
 0x732   :  { %582 = vrsqrt.f32 %v374_v43 }
 0x73f   :  { %v583_v46 = vpop.eup %582 }
 0x740   :  { %v384_v47 = vmul.f32 %v583_v46, %v383_v45 }
 0x742   :  { %v387_v48 = vsel %vm386_vm2, %v384_v47, 0.0 }
 0x743   :  { %v388_v49 = vadd.f32 %v387_v48, %v363_v37 }
 0x745   :  { %390 = vst [vmem:[#allocation1 + $0x8] sm:$0xff] %v388_v49 }
 0x74c   :  { %v393_v50 = vld [vmem:[#allocation1 + $0xb] ss:$0 sm:$0xff] }
 0x74d   :  { %v405_v51 = vmul.f32 %v393_v50, %v388_v49  ;;  %v396_v52 = vmul.f32 %v393_v50, %v393_v50 }
 0x74f   :  { %406 = vadd.xlane.f32.xlu0 %v405_v51  ;;  %397 = vadd.xlane.f32.xlu1 %v396_v52 }
 0x7d8   :  { %v398_v54 = vpop.xlane.xlu1 %397  ;;  %v407_v56 = vpop.xlane.xlu0 %406 }
 0x7d9   :  { %v399_v55 = vsub.f32 %v395_v53, %v398_v54  ;;  %v408_v57 = vsub.f32 %v616_v16, %v407_v56 }
 0x7db   :  { %584 = vrsqrt.f32 %v399_v55 }
 0x7e8   :  { %v585_v60 = vpop.eup %584 }
 0x7e9   :  { %v409_v61 = vmul.f32 %v585_v60, %v408_v57 }
 0x7eb   :  { %v412_v62 = vsel %vm411_vm5, %v409_v61, 0.0 }
 0x7ec   :  { %v413_v63 = vadd.f32 %v412_v62, %v388_v49 }
 0x7ee   :  { %415 = vst [vmem:[#allocation1 + $0x8] sm:$0xff] %v413_v63 }
 0x7f5   :  { %v418_v0 = vld [vmem:[#allocation1 + $0xc] ss:$0 sm:$0xff] }
 0x7f6   :  { %v430_v1 = vmul.f32 %v418_v0, %v413_v63  ;;  %v421_v2 = vmul.f32 %v418_v0, %v418_v0 }
 0x7f8   :  { %431 = vadd.xlane.f32.xlu0 %v430_v1  ;;  %422 = vadd.xlane.f32.xlu1 %v421_v2 }
 0x881   :  { %v423_v5 = vpop.xlane.xlu1 %422  ;;  %v432_v7 = vpop.xlane.xlu0 %431 }
 0x882   :  { %v424_v6 = vsub.f32 %v420_v3, %v423_v5  ;;  %v433_v8 = vsub.f32 %v616_v16, %v432_v7 }
 0x884   :  { %586 = vrsqrt.f32 %v424_v6 }
 0x891   :  { %v587_v10 = vpop.eup %586 }
 0x892   :  { %v434_v11 = vmul.f32 %v587_v10, %v433_v8 }
 0x894   :  { %v437_v12 = vsel %vm436_vm8, %v434_v11, 0.0 }
 0x895   :  { %v438_v13 = vadd.f32 %v437_v12, %v413_v63 }
 0x897   :  { %440 = vst [vmem:[#allocation1 + $0x8] sm:$0xff] %v438_v13 }
 0x89e   :  { %v443_v14 = vld [vmem:[#allocation1 + $0xd] ss:$0 sm:$0xff] }
 0x89f   :  { %v455_v15 = vmul.f32 %v443_v14, %v438_v13  ;;  %v446_v17 = vmul.f32 %v443_v14, %v443_v14 }
 0x8a1   :  { %456 = vadd.xlane.f32.xlu0 %v455_v15  ;;  %447 = vadd.xlane.f32.xlu1 %v446_v17 }
 0x92a   :  { %v448_v19 = vpop.xlane.xlu1 %447  ;;  %v457_v21 = vpop.xlane.xlu0 %456 }
 0x92b   :  { %v449_v20 = vsub.f32 %v445_v18, %v448_v19  ;;  %v458_v22 = vsub.f32 %v616_v16, %v457_v21 }
 0x92d   :  { %588 = vrsqrt.f32 %v449_v20 }
 0x93a   :  { %v589_v23 = vpop.eup %588 }
 0x93b   :  { %v459_v24 = vmul.f32 %v589_v23, %v458_v22 }
 0x93d   :  { %v462_v25 = vsel %vm461_vm11, %v459_v24, 0.0 }
 0x93e   :  { %v463_v26 = vadd.f32 %v462_v25, %v438_v13 }
 0x940   :  { %465 = vst [vmem:[#allocation1 + $0x8] sm:$0xff] %v463_v26 }
 0x947   :  { %v468_v27 = vld [vmem:[#allocation1 + $0xe] ss:$0 sm:$0xff] }
 0x948   :  { %v480_v28 = vmul.f32 %v468_v27, %v463_v26  ;;  %v471_v29 = vmul.f32 %v468_v27, %v468_v27 }
 0x94a   :  { %481 = vadd.xlane.f32.xlu0 %v480_v28  ;;  %472 = vadd.xlane.f32.xlu1 %v471_v29 }
 0x94e   :  { %296 = vadd.xlane.f32.xlu0 %v295_v30 }
 0x9d3   :  { %v482_v32 = vpop.xlane.xlu0 %481  ;;  %v473_v33 = vpop.xlane.xlu1 %472 }
 0x9d4   :  { %v474_v34 = vsub.f32 %v470_v31, %v473_v33  ;;  %v483_v59 = vsub.f32 %v616_v16, %v482_v32 }
 0x9d6   :  { %590 = vrsqrt.f32 %v474_v34 }
 0x9d7   :  { %v297_v35 = vpop.xlane.xlu0 %296 }
 0x9d8   :  { %v298_v36 = vsub.f32 %v608_v4, %v297_v35 }
 0x9da   :  { %v299_v37 = vmul.f32 %v658_v9, %v298_v36 }
 0x9dc   :  { %v302_v38 = vsel %vm301_vm14, %v299_v37, 0.0 }
 0x9dd   :  { %v303_v39 = vadd.f32 %v302_v38, %v648_v58  ;;  %v495_v58 = vld [vmem:[#allocation0 + $0xf] ss:$0 sm:$0xff] }
 0x9df   :  { %304 = vst [vmem:[#allocation1] sm:$0xff] %v303_v39  ;;  %547 = vst [vmem:[%s691_s1] sm:$0xff] %v303_v39 }
 0x9e3   :  { %v591_v40 = vpop.eup %590 }
 0x9e4   :  { %v484_v4 = vmul.f32 %v591_v40, %v483_v59 }
 0x9e6   :  { %v487_v41 = vsel %vm486_vm6, %v484_v4, 0.0 }
 0x9e7   :  { %v488_v42 = vadd.f32 %v487_v41, %v463_v26 }
 0x9e9   :  { %490 = vst [vmem:[#allocation1 + $0x8] sm:$0xff] %v488_v42 }
 0x9f0   :  { %v493_v43 = vld [vmem:[#allocation1 + $0xf] ss:$0 sm:$0xff] }
 0x9f1   :  { %v496_v9 = vmul.f32 %v493_v43, %v493_v43  ;;  %v505_v44 = vmul.f32 %v493_v43, %v488_v42 }
 0x9f3   :  { %497 = vadd.xlane.f32.xlu1 %v496_v9 }
 0x9f7   :  { %506 = vadd.xlane.f32.xlu1 %v505_v44 }
 0xa7c   :  { %v498_v45 = vpop.xlane.xlu1 %497 }
 0xa7d   :  { %v499_v46 = vsub.f32 %v495_v58, %v498_v45 }
 0xa7f   :  { %592 = vrsqrt.f32 %v499_v46 }
 0xa80   :  { %v507_v47 = vpop.xlane.xlu1 %506 }
 0xa81   :  { %v508_v48 = vsub.f32 %v616_v16, %v507_v47 }
 0xa8c   :  { %v593_v49 = vpop.eup %592 }
 0xa8d   :  { %v509_v50 = vmul.f32 %v593_v49, %v508_v48 }
 0xa8f   :  { %v512_v51 = vsel %vm511_vm1, %v509_v50, 0.0 }
 0xa90   :  { %v513_v52 = vadd.f32 %v512_v51, %v488_v42 }
 0xa92   :  { %515 = vst [vmem:[#allocation1 + $0x8] sm:$0xff] %v513_v52  ;;  %549 = vst [vmem:[%s691_s1 + $0x8] sm:$0xff] %v513_v52 }

// kernel: custom-call.9
= control target key start
LH: loop header
LB: loop body
LE: loop exit
PB: predicated region body
PF: predicated region fallthrough
CT: control target
= control target key end

     0   :  { %v39_v0 = vlaneseq  ;;  %v334_v9 = vmov -1.0   ;;  %v335_v53 = vmov 0.0   ;;  %s403_s0 = inlined_call_operand.vmem [shape: f32[1,16,16], index: 0, kind: input, shape index: {}]   ;;  %s404_s1 = inlined_call_operand.vmem [shape: f32[1,16,16], index: 1, kind: output, shape index: {}]  }
   0x1   :  { %v32_v1 = vld [vmem:[%s403_s0] sm:$0xff]  ;;  %v34_v36 = vld [vmem:[%s403_s0 + $0x8] sm:$0xff] }
   0x2   :  { %v349_v2 = vand.u32 127, %v39_v0  ;;  %v43_v3 = vshrl.u32 %v39_v0, 7 }
   0x4   :  { %vm45_vm0 = vcmp.eq.s32.totalorder %v43_v3, %v349_v2  ;;  %vm41_vm1 = vcmp.lt.s32.totalorder %v349_v2, 16  ;;  %vm50_vm2 = vcmp.ge.s32.totalorder %v43_v3, %v349_v2  ;;  %vm80_vm4 = vcmp.eq.s32.totalorder %v349_v2, 0 }
   0x5   :  { %v47_v4 = vsel %vm45_vm0, %v32_v1, 0.0  ;;  %vm51_vm3 = vmand %vm50_vm2, %vm41_vm1  ;;  %vm77_vm5 = vcmp.eq.s32.totalorder %v349_v2, %v43_v3  ;;  %v81_v10 = vsel %vm80_vm4, 1.0, %v334_v9  ;;  %vm95_vm6 = vcmp.eq.s32.totalorder %v349_v2, 1 }
   0x6   :  { %48 = vadd.xlane.f32.xlu0 %v47_v4  ;;  %v52_v6 = vsel %vm51_vm3, %v32_v1, 0.0  ;;  %v82_v11 = vsel %vm77_vm5, %v81_v10, 0.0  ;;  %vm105_vm7 = vcmp.eq.s32.totalorder %v349_v2, 2  ;;  %vm115_vm8 = vcmp.eq.s32.totalorder %v349_v2, 3 }
   0x7   :  { %vm125_vm9 = vcmp.eq.s32.totalorder %v349_v2, 4  ;;  %v60_v31 = vadd.s32 8, %v43_v3  ;;  %vm135_vm11 = vcmp.eq.s32.totalorder %v349_v2, 5  ;;  %vm145_vm14 = vcmp.eq.s32.totalorder %v349_v2, 6 }
   0x8   :  { %vm155_vm0 = vcmp.eq.s32.totalorder %v349_v2, 7  ;;  %vm179_vm2 = vcmp.eq.s32.totalorder %v349_v2, 9  ;;  %vm193_vm3 = vcmp.eq.s32.totalorder %v349_v2, 10  ;;  %vm207_vm4 = vcmp.eq.s32.totalorder %v349_v2, 11 }
   0x9   :  { %vm61_vm10 = vcmp.eq.s32.totalorder %v60_v31, %v349_v2  ;;  %vm66_vm12 = vcmp.ge.s32.totalorder %v60_v31, %v349_v2  ;;  %vm88_vm15 = vcmp.eq.s32.totalorder %v349_v2, %v60_v31  ;;  %vm221_vm5 = vcmp.eq.s32.totalorder %v349_v2, 12 }
   0xa   :  { %v63_v37 = vsel %vm61_vm10, %v34_v36, 0.0  ;;  %vm67_vm13 = vmand %vm66_vm12, %vm41_vm1  ;;  %v89_v54 = vsel %vm88_vm15, -1.0, %v335_v53  ;;  %vm165_vm1 = vcmp.eq.s32.totalorder %v349_v2, 8 }
   0xb   :  { %v68_v44 = vsel %vm67_vm13, %v34_v36, 0.0 }
  0x8f   :  { %v352_v5 = vpop.xlane.xlu0 %48 }
  0x90   :  { %330 = vrcp.f32 %v352_v5  ;;  %vm274_vm10 = vweird.f32 %v352_v5 }
  0x9d   :  { %v359_v7 = vpop.eup %330 }
  0x9e   :  { %v54_v8 = vmul.f32 %v359_v7, %v52_v6 }
  0xa0   :  { %55 = vst [vmem:[#allocation2] sm:$0xff] %v54_v8 }
  0xa7   :  { %v91_v12 = vld [vmem:[#allocation2 + $0x1] ss:$0 sm:$0xff]  ;;  %v101_v15 = vld [vmem:[#allocation2 + $0x2] ss:$0 sm:$0xff]  ;;  %v111_v20 = vld [vmem:[#allocation2 + $0x3] ss:$0 sm:$0xff] }
  0xa8   :  { %v92_v13 = vxor.u32 2147483648, %v91_v12  ;;  %v102_v17 = vxor.u32 2147483648, %v101_v15  ;;  %v112_v22 = vxor.u32 2147483648, %v111_v20  ;;  %v121_v25 = vld [vmem:[#allocation2 + $0x4] ss:$0 sm:$0xff] }
  0xa9   :  { %v122_v27 = vxor.u32 2147483648, %v121_v25  ;;  %v131_v30 = vld [vmem:[#allocation2 + $0x5] ss:$0 sm:$0xff]  ;;  %v141_v38 = vld [vmem:[#allocation2 + $0x6] ss:$0 sm:$0xff] }
  0xaa   :  { %v96_v14 = vmul.f32 %v92_v13, %v82_v11  ;;  %v132_v33 = vxor.u32 2147483648, %v131_v30  ;;  %v142_v40 = vxor.u32 2147483648, %v141_v38  ;;  %v151_v47 = vld [vmem:[#allocation2 + $0x7] ss:$0 sm:$0xff] }
  0xab   :  { %v152_v50 = vxor.u32 2147483648, %v151_v47 }
  0xac   :  { %97 = vadd.xlane.f32.xlu0 %v96_v14 }
 0x135   :  { %v98_v16 = vpop.xlane.xlu0 %97 }
 0x136   :  { %v99_v18 = vsel %vm95_vm6, %v98_v16, %v82_v11  ;;  %vm235_vm6 = vcmp.eq.s32.totalorder %v349_v2, 13 }
 0x137   :  { %v106_v19 = vmul.f32 %v102_v17, %v99_v18 }
 0x139   :  { %107 = vadd.xlane.f32.xlu1 %v106_v19 }
 0x1c2   :  { %v108_v21 = vpop.xlane.xlu1 %107 }
 0x1c3   :  { %v109_v23 = vsel %vm105_vm7, %v108_v21, %v99_v18  ;;  %vm249_vm7 = vcmp.eq.s32.totalorder %v349_v2, 14 }
 0x1c4   :  { %v116_v24 = vmul.f32 %v112_v22, %v109_v23 }
 0x1c6   :  { %117 = vadd.xlane.f32.xlu1 %v116_v24 }
 0x24f   :  { %v118_v26 = vpop.xlane.xlu1 %117 }
 0x250   :  { %v119_v28 = vsel %vm115_vm8, %v118_v26, %v109_v23  ;;  %vm263_vm8 = vcmp.eq.s32.totalorder %v349_v2, 15 }
 0x251   :  { %v126_v29 = vmul.f32 %v122_v27, %v119_v28 }
 0x253   :  { %127 = vadd.xlane.f32.xlu0 %v126_v29 }
 0x2dc   :  { %v128_v32 = vpop.xlane.xlu0 %127 }
 0x2dd   :  { %v129_v34 = vsel %vm125_vm9, %v128_v32, %v119_v28 }
 0x2de   :  { %v136_v35 = vmul.f32 %v132_v33, %v129_v34 }
 0x2e0   :  { %137 = vadd.xlane.f32.xlu1 %v136_v35 }
 0x2e4   :  { %64 = vadd.xlane.f32.xlu1 %v63_v37 }
 0x369   :  { %v138_v39 = vpop.xlane.xlu1 %137 }
 0x36a   :  { %v139_v41 = vsel %vm135_vm11, %v138_v39, %v129_v34 }
 0x36b   :  { %v146_v42 = vmul.f32 %v142_v40, %v139_v41 }
 0x36d   :  { %147 = vadd.xlane.f32.xlu0 %v146_v42  ;;  %v373_v43 = vpop.xlane.xlu1 %64 }
 0x36e   :  { %332 = vrcp.f32 %v373_v43  ;;  %vm279_vm9 = vweird.f32 %v373_v43 }
 0x37b   :  { %v379_v45 = vpop.eup %332 }
 0x37c   :  { %v70_v46 = vmul.f32 %v379_v45, %v68_v44 }
 0x37e   :  { %71 = vst [vmem:[#allocation2 + $0x8] sm:$0xff] %v70_v46 }
 0x385   :  { %v161_v48 = vld [vmem:[#allocation2 + $0x8] ss:$0 sm:$0xff]  ;;  %v175_v59 = vld [vmem:[#allocation2 + $0x9] ss:$0 sm:$0xff]  ;;  %v189_v4 = vld [vmem:[#allocation2 + $0xa] ss:$0 sm:$0xff] }
 0x386   :  { %v162_v51 = vxor.u32 2147483648, %v161_v48  ;;  %v176_v62 = vxor.u32 2147483648, %v175_v59  ;;  %v190_v9 = vxor.u32 2147483648, %v189_v4  ;;  %v203_v14 = vld [vmem:[#allocation2 + $0xb] ss:$0 sm:$0xff] }
 0x387   :  { %v204_v17 = vxor.u32 2147483648, %v203_v14  ;;  %v217_v22 = vld [vmem:[#allocation2 + $0xc] ss:$0 sm:$0xff]  ;;  %v231_v30 = vld [vmem:[#allocation2 + $0xd] ss:$0 sm:$0xff] }
 0x388   :  { %v170_v56 = vmul.f32 %v162_v51, %v89_v54  ;;  %v218_v25 = vxor.u32 2147483648, %v217_v22  ;;  %v232_v33 = vxor.u32 2147483648, %v231_v30  ;;  %v245_v38 = vld [vmem:[#allocation2 + $0xe] ss:$0 sm:$0xff]  ;;  %v259_v48 = vld [vmem:[#allocation2 + $0xf] ss:$0 sm:$0xff] }
 0x3f6   :  { %v148_v49 = vpop.xlane.xlu0 %147 }
 0x3f7   :  { %v149_v52 = vsel %vm145_vm14, %v148_v49, %v139_v41  ;;  %v246_v41 = vxor.u32 2147483648, %v245_v38 }
 0x3f8   :  { %v156_v55 = vmul.f32 %v152_v50, %v149_v52 }
 0x3fa   :  { %157 = vadd.xlane.f32.xlu0 %v156_v55 }
 0x3fe   :  { %171 = vadd.xlane.f32.xlu0 %v170_v56 }
 0x483   :  { %v158_v57 = vpop.xlane.xlu0 %157 }
 0x484   :  { %v159_v58 = vsel %vm155_vm0, %v158_v57, %v149_v52 }
 0x485   :  { %v166_v60 = vmul.f32 %v162_v51, %v159_v58  ;;  %v260_v51 = vxor.u32 2147483648, %v259_v48 }
 0x487   :  { %v172_v61 = vpop.xlane.xlu0 %171  ;;  %167 = vadd.xlane.f32.xlu1 %v166_v60 }
 0x488   :  { %v173_v63 = vsel %vm165_vm1, %v172_v61, %v89_v54 }
 0x489   :  { %v184_v0 = vmul.f32 %v176_v62, %v173_v63 }
 0x48b   :  { %185 = vadd.xlane.f32.xlu0 %v184_v0 }
 0x510   :  { %v168_v1 = vpop.xlane.xlu1 %167 }
 0x511   :  { %v169_v3 = vsel %vm165_vm1, %v168_v1, %v159_v58 }
 0x512   :  { %v180_v6 = vmul.f32 %v176_v62, %v169_v3 }
 0x514   :  { %v186_v8 = vpop.xlane.xlu0 %185  ;;  %181 = vadd.xlane.f32.xlu1 %v180_v6 }
 0x515   :  { %v187_v10 = vsel %vm179_vm2, %v186_v8, %v173_v63 }
 0x516   :  { %v198_v11 = vmul.f32 %v190_v9, %v187_v10 }
 0x518   :  { %199 = vadd.xlane.f32.xlu0 %v198_v11 }
 0x59d   :  { %v182_v12 = vpop.xlane.xlu1 %181 }
 0x59e   :  { %v183_v13 = vsel %vm179_vm2, %v182_v12, %v169_v3 }
 0x59f   :  { %v194_v15 = vmul.f32 %v190_v9, %v183_v13 }
 0x5a1   :  { %v200_v16 = vpop.xlane.xlu0 %199  ;;  %195 = vadd.xlane.f32.xlu1 %v194_v15 }
 0x5a2   :  { %v201_v18 = vsel %vm193_vm3, %v200_v16, %v187_v10 }
 0x5a3   :  { %v212_v19 = vmul.f32 %v204_v17, %v201_v18 }
 0x5a5   :  { %213 = vadd.xlane.f32.xlu0 %v212_v19 }
 0x62a   :  { %v196_v20 = vpop.xlane.xlu1 %195 }
 0x62b   :  { %v197_v21 = vsel %vm193_vm3, %v196_v20, %v183_v13 }
 0x62c   :  { %v208_v23 = vmul.f32 %v204_v17, %v197_v21 }
 0x62e   :  { %v214_v24 = vpop.xlane.xlu0 %213  ;;  %209 = vadd.xlane.f32.xlu1 %v208_v23 }
 0x62f   :  { %v215_v26 = vsel %vm207_vm4, %v214_v24, %v201_v18 }
 0x630   :  { %v226_v27 = vmul.f32 %v218_v25, %v215_v26 }
 0x632   :  { %227 = vadd.xlane.f32.xlu0 %v226_v27 }
 0x6b7   :  { %v210_v28 = vpop.xlane.xlu1 %209 }
 0x6b8   :  { %v211_v29 = vsel %vm207_vm4, %v210_v28, %v197_v21 }
 0x6b9   :  { %v222_v31 = vmul.f32 %v218_v25, %v211_v29 }
 0x6bb   :  { %v228_v32 = vpop.xlane.xlu0 %227  ;;  %223 = vadd.xlane.f32.xlu1 %v222_v31 }
 0x6bc   :  { %v229_v34 = vsel %vm221_vm5, %v228_v32, %v215_v26 }
 0x6bd   :  { %v240_v35 = vmul.f32 %v232_v33, %v229_v34 }
 0x6bf   :  { %241 = vadd.xlane.f32.xlu0 %v240_v35 }
 0x744   :  { %v224_v36 = vpop.xlane.xlu1 %223 }
 0x745   :  { %v225_v37 = vsel %vm221_vm5, %v224_v36, %v211_v29 }
 0x746   :  { %v236_v39 = vmul.f32 %v232_v33, %v225_v37 }
 0x748   :  { %v242_v40 = vpop.xlane.xlu0 %241  ;;  %237 = vadd.xlane.f32.xlu1 %v236_v39 }
 0x749   :  { %v243_v42 = vsel %vm235_vm6, %v242_v40, %v229_v34 }
 0x74a   :  { %v254_v44 = vmul.f32 %v246_v41, %v243_v42 }
 0x74c   :  { %255 = vadd.xlane.f32.xlu0 %v254_v44 }
 0x7d1   :  { %v238_v46 = vpop.xlane.xlu1 %237 }
 0x7d2   :  { %v239_v47 = vsel %vm235_vm6, %v238_v46, %v225_v37 }
 0x7d3   :  { %v250_v49 = vmul.f32 %v246_v41, %v239_v47 }
 0x7d5   :  { %v256_v50 = vpop.xlane.xlu0 %255  ;;  %251 = vadd.xlane.f32.xlu1 %v250_v49 }
 0x7d6   :  { %v257_v52 = vsel %vm249_vm7, %v256_v50, %v243_v42 }
 0x7d7   :  { %v268_v53 = vmul.f32 %v260_v51, %v257_v52 }
 0x7d9   :  { %269 = vadd.xlane.f32.xlu0 %v268_v53 }
 0x85e   :  { %v252_v54 = vpop.xlane.xlu1 %251 }
 0x85f   :  { %v253_v55 = vsel %vm249_vm7, %v252_v54, %v239_v47 }
 0x860   :  { %v264_v56 = vmul.f32 %v260_v51, %v253_v55 }
 0x862   :  { %v270_v57 = vpop.xlane.xlu0 %269  ;;  %265 = vadd.xlane.f32.xlu1 %v264_v56 }
 0x863   :  { %v271_v58 = vsel %vm263_vm8, %v270_v57, %v257_v52 }
 0x864   :  { %v278_v59 = vmul.f32 %v379_v45, %v271_v58 }
 0x866   :  { %v280_v60 = vsel %vm279_vm9, %v271_v58, %v278_v59 }
 0x867   :  { %316 = vst [vmem:[%s404_s1 + $0x8] sm:$0xff] %v280_v60 }
 0x8eb   :  { %v266_v61 = vpop.xlane.xlu1 %265 }
 0x8ec   :  { %v267_v62 = vsel %vm263_vm8, %v266_v61, %v253_v55 }
 0x8ed   :  { %v273_v63 = vmul.f32 %v359_v7, %v267_v62 }
 0x8ef   :  { %v275_v2 = vsel %vm274_vm10, %v267_v62, %v273_v63 }
 0x8f0   :  { %314 = vst [vmem:[%s404_s1] sm:$0xff] %v275_v2 }

// kernel: deep_kernel_gp_forward.3
= control target key start
LH: loop header
LB: loop body
LE: loop exit
PB: predicated region body
PF: predicated region fallthrough
CT: control target
= control target key end

     0   :  { %vm100_vm0 = vcmask 64512   ;;  %v255_v4 = vmov 0.0   ;;  %vm256_vm1 = vmmov 0   ;;  %vm26_vm2 = vcmask 130048   ;;  %s319_s3 = inlined_call_operand.vmem [shape: f32[16,8], index: 3, kind: input, shape index: {}]   ;;  %s320_s1 = inlined_call_operand.vmem [shape: f32[16,8], index: 1, kind: input, shape index: {}]   ;;  %s321_s0 = inlined_call_operand.vmem [shape: f32[1,16], index: 0, kind: input, shape index: {}]   ;;  %s322_s5 = inlined_call_operand.vmem [shape: f32[2,8], index: 5, kind: output, shape index: {}]   ;;  %s323_s2 = inlined_call_operand.vmem [shape: f32[8,8], index: 2, kind: input, shape index: {}]   ;;  %s324_s4 = inlined_call_operand.<no memory space> [shape: f32[1], index: 4, kind: input, shape index: {}]  }
   0x1   :  { %v23_v0 = vld [vmem:[%s319_s3] sm:$0xff]  ;;  %v24_v1 = vld [vmem:[%s319_s3 + $0x8] sm:$0xff]  ;;  %246 = vmatprep.subr.mxu1 %v255_v4  ;;  %239 = vmatprep.subr.mxu0 %v255_v4  ;;  %vm224_vm3 = vcmask 57344   ;;  %v222_v22 = vstv %s324_s4 }
   0x2   :  { %v101_v2 = vsel %vm100_vm0, %v23_v0, 0.0  ;;  %v104_v3 = vsel %vm100_vm0, %v24_v1, 0.0  ;;  %v22_v5 = vld [vmem:[%s320_s1 + $0x8] sm:$0xff]  ;;  %247 = vmatpush3.msra.mxu1 %v24_v1  ;;  %250 = vmatprep.mubr.msk.f32.mxu1 %vm256_vm1, %v255_v4  ;;  %v21_v6 = vld [vmem:[%s320_s1] sm:$0xff] }
   0x3   :  { %102 = vadd.xlane.f32.xlu0 %v101_v2  ;;  %240 = vmatpush3.msra.mxu0 %v22_v5  ;;  %v25_v7 = vld [vmem:[%s321_s0] sm:$0x1] }
   0x4   :  { %248 = vmatprep.subr.mxu1 %v255_v4  ;;  %241 = vmatprep.subr.mxu0 %v255_v4  ;;  %v212_v13 = vld [vmem:[%s323_s2] sm:$0xff] }
   0x5   :  { %249 = vmatpush3.msra.mxu1 %v23_v0  ;;  %243 = vmatprep.mubr.msk.f32.mxu0 %vm256_vm1, %v255_v4  ;;  %v213_v14 = vsel %vm100_vm0, %v212_v13, 0.0 }
   0x6   :  { %242 = vmatpush3.msra.mxu0 %v21_v6  ;;  %v214_v15 = vrot.slane %v213_v14, 4 }
   0x7   :  { %105 = vadd.xlane.f32.xlu0 %v104_v3  ;;  %244 = vmatmul.mubr.msk.f32.vlgmr.msra.gmra.mxu0 %vm26_vm2, %v25_v7 }
   0x8   :  { %v215_v16 = vadd.f32 %v214_v15, %v213_v14 }
   0xa   :  { %v216_v17 = vrot.slane %v215_v16, 2 }
   0xc   :  { %v217_v18 = vadd.f32 %v216_v17, %v215_v16 }
   0xe   :  { %v218_v19 = vrot.slane %v217_v18, 1 }
  0x10   :  { %v219_v20 = vadd.f32 %v218_v19, %v217_v18 }
  0x8c   :  { %v103_v8 = vpop.xlane.xlu0 %102 }
  0x8d   :  { %107 = vxpose.xlu1.b32.start [1/2] (short) (narrow) %v103_v8, 8 }
  0x90   :  { %v106_v9 = vpop.xlane.xlu0 %105 }
  0x91   :  { %108 = vxpose.xlu1.b32.end [2/2] (short) (narrow) %v106_v9, 8 }
  0xc7   :  { %v96_v11 = vpop.f32.mrf.mxu0 }
  0xc8   :  { %225 = vst.msk [vmem:[%s322_s5] sm:$0x1] %vm224_vm3, %v96_v11 }
  0xc9   :  { %v245_v12 = vpop.f32.mrf.mxu0 }
 0x109   :  { %v123_v10 = vpop.trf.xlu1 }
 0x10a   :  { %251 = vmatmul.mubr.msk.f32.vlgmr.msra.gmra.mxu1 %vm26_vm2, %v123_v10 }
 0x1ca   :  { %v208_v21 = vpop.f32.mrf.mxu1 }
 0x1cb   :  { %v220_v23 = vsub.f32 %v219_v20, %v208_v21 }
 0x1cc   :  { %v252_v24 = vpop.f32.mrf.mxu1 }
 0x1cd   :  { %v223_v25 = vadd.f32 %v222_v22, %v220_v23 }
 0x1cf   :  { %226 = vst.msk [vmem:[%s322_s5 + $0x1] sm:$0x1] %vm224_vm3, %v223_v25 }

// kernel: deep_kernel_gp_forward.2
= control target key start
LH: loop header
LB: loop body
LE: loop exit
PB: predicated region body
PF: predicated region fallthrough
CT: control target
= control target key end

     0   :  { %vm44_vm0 = vcmask 64512   ;;  %v674_v0 = vmov 0.0   ;;  %vm675_vm1 = vmmov 0   ;;  %vm160_vm3 = vcmask 654336   ;;  %s868_s1 = inlined_call_operand.vmem [shape: f32[8,80], index: 1, kind: input, shape index: {}]   ;;  %s869_s0 = inlined_call_operand.vmem [shape: f32[24,8], index: 0, kind: input, shape index: {}]   ;;  %s870_s3 = inlined_call_operand.vmem [shape: f32[80,40], index: 3, kind: input, shape index: {}]   ;;  %s871_s5 = inlined_call_operand.vmem [shape: f32[40,8], index: 5, kind: input, shape index: {}]   ;;  %s872_s2 = inlined_call_operand.vmem [shape: f32[1,80], index: 2, kind: input, shape index: {}]   ;;  %s873_s4 = inlined_call_operand.vmem [shape: f32[1,40], index: 4, kind: input, shape index: {}]   ;;  %s874_s6 = inlined_call_operand.vmem [shape: f32[1,8], index: 6, kind: input, shape index: {}]   ;;  %s875_s7 = inlined_call_operand.vmem [shape: f32[1,8], index: 7, kind: input, shape index: {}]   ;;  %s876_s8 = inlined_call_operand.<no memory space> [shape: f32[1], index: 8, kind: input, shape index: {}]   ;;  %s877_s9 = inlined_call_operand.vmem [shape: f32[24,24], index: 9, kind: output, shape index: {}]  }
   0x1   :  { %592 = vmatprep.subr.mxu1 %v674_v0  ;;  %v36_v1 = vld [vmem:[%s868_s1] sm:$0xff]  ;;  %594 = vmatprep.mubr.msk.f32.mxu1 %vm675_vm1, %v674_v0  ;;  %v152_v3 = vld [vmem:[%s870_s3 + $0x48] sm:$0xff]  ;;  %v150_v6 = vld [vmem:[%s870_s3 + $0x38] sm:$0xff]  ;;  %vm271_vm7 = vcmask 326656   ;;  %vm534_vm10 = vcmask 195584  }
   0x2   :  { %v33_v2 = vld [vmem:[%s869_s0] sm:$0xff]  ;;  %593 = vmatpush3.msra.mxu1 %v36_v1  ;;  %632 = vmatprep.subr.mxu0 %v674_v0  ;;  %v34_v5 = vld [vmem:[%s869_s0 + $0x8] sm:$0xff]  ;;  %v149_v7 = vld [vmem:[%s870_s3 + $0x30] sm:$0xff] }
   0x3   :  { %595 = vmatmul.mubr.msk.f32.vlgmr.msra.gmra.mxu1 %vm44_vm0, %v33_v2  ;;  %603 = vmatprep.subr.mxu1 %v674_v0  ;;  %v151_v4 = vld [vmem:[%s870_s3 + $0x40] sm:$0xff]  ;;  %v35_v8 = vld [vmem:[%s869_s0 + $0x10] sm:$0xff]  ;;  %v148_v9 = vld [vmem:[%s870_s3 + $0x28] sm:$0xff] }
   0x4   :  { %597 = vmatprep.mubr.msk.f32.mxu1 %vm675_vm1, %v674_v0  ;;  %604 = vmatpush3.msra.mxu1 %v152_v3  ;;  %v147_v10 = vld [vmem:[%s870_s3 + $0x20] sm:$0xff]  ;;  %v146_v11 = vld [vmem:[%s870_s3 + $0x18] sm:$0xff]  ;;  %v145_v12 = vld [vmem:[%s870_s3 + $0x10] sm:$0xff] }
   0x5   :  { %605 = vmatprep.subr.mxu1 %v674_v0  ;;  %642 = vmatprep.mubr.msk.f32.mxu0 %vm675_vm1, %v674_v0  ;;  %v144_v13 = vld [vmem:[%s870_s3 + $0x8] sm:$0xff]  ;;  %v143_v14 = vld [vmem:[%s870_s3] sm:$0xff]  ;;  %v262_v16 = vld [vmem:[%s871_s5 + $0x18] sm:$0xff] }
   0x6   :  { %606 = vmatpush3.msra.mxu1 %v151_v4  ;;  %v263_v15 = vld [vmem:[%s871_s5 + $0x20] sm:$0xff]  ;;  %v261_v33 = vld [vmem:[%s871_s5 + $0x10] sm:$0xff]  ;;  %v260_v34 = vld [vmem:[%s871_s5 + $0x8] sm:$0xff] }
   0x7   :  { %598 = vmatmul.mubr.msk.f32.gmra.mxu1 %vm44_vm0, %v34_v5  ;;  %607 = vmatprep.subr.mxu1 %v674_v0  ;;  %v542_v17 = vld [vmem:[%s872_s2] ss:$0 sm:$0xff] }
   0x8   :  { %600 = vmatprep.mubr.msk.f32.mxu1 %vm675_vm1, %v674_v0  ;;  %608 = vmatpush3.msra.mxu1 %v150_v6  ;;  %v259_v35 = vld [vmem:[%s871_s5] sm:$0xff] }
   0x9   :  { %609 = vmatprep.subr.mxu1 %v674_v0  ;;  %633 = vmatpush3.msra.mxu0 %v263_v15  ;;  %v546_v36 = vld [vmem:[%s873_s4] ss:$0 sm:$0xff] }
   0xa   :  { %610 = vmatpush3.msra.mxu1 %v149_v7  ;;  %634 = vmatprep.subr.mxu0 %v674_v0  ;;  %v550_v52 = vld [vmem:[%s874_s6] ss:$0 sm:$0xff] }
   0xb   :  { %601 = vmatmul.mubr.msk.f32.gmra.mxu1 %vm44_vm0, %v35_v8  ;;  %611 = vmatprep.subr.mxu1 %v674_v0  ;;  %v554_v54 = vld [vmem:[%s875_s7] ss:$0 sm:$0xff] }
   0xc   :  { %612 = vmatpush3.msra.mxu1 %v148_v9  ;;  %623 = vmatprep.mubr.msk.f32.mxu1 %vm675_vm1, %v674_v0 }
   0xd   :  { %613 = vmatprep.subr.mxu1 %v674_v0  ;;  %635 = vmatpush3.msra.mxu0 %v262_v16 }
   0xe   :  { %614 = vmatpush3.msra.mxu1 %v147_v10  ;;  %636 = vmatprep.subr.mxu0 %v674_v0 }
   0xf   :  { %615 = vmatprep.subr.mxu1 %v674_v0  ;;  %637 = vmatpush3.msra.mxu0 %v261_v33 }
  0x10   :  { %616 = vmatpush3.msra.mxu1 %v146_v11  ;;  %638 = vmatprep.subr.mxu0 %v674_v0 }
  0x11   :  { %617 = vmatprep.subr.mxu1 %v674_v0  ;;  %639 = vmatpush3.msra.mxu0 %v260_v34 }
  0x12   :  { %618 = vmatpush3.msra.mxu1 %v145_v12  ;;  %640 = vmatprep.subr.mxu0 %v674_v0 }
  0x13   :  { %619 = vmatprep.subr.mxu1 %v674_v0  ;;  %641 = vmatpush3.msra.mxu0 %v259_v35 }
  0x14   :  { %620 = vmatpush3.msra.mxu1 %v144_v13  ;;  %651 = vmatprep.subr.mxu0 %v674_v0 }
  0x15   :  { %621 = vmatprep.subr.mxu1 %v674_v0 }
  0x16   :  { %622 = vmatpush3.msra.mxu1 %v143_v14 }
  0xc3   :  { %v120_v18 = vpop.f32.mrf.mxu1 }
  0xc4   :  { %v121_v19 = vadd.f32 %v542_v17, %v120_v18  ;;  %v510_v18 = vlaneseq }
  0xc5   :  { %v596_v20 = vpop.f32.mrf.mxu1 }
  0xc6   :  { %vm134_vm2 = vcmp.ge.f32.partialorder %v121_v19, 0.0  ;;  %v137_v21 = vmul.f32 0.01, %v121_v19 }
  0xc7   :  { %v125_v22 = vpop.f32.mrf.mxu1 }
  0xc8   :  { %v140_v23 = vsel %vm134_vm2, %v121_v19, %v137_v21  ;;  %v126_v24 = vadd.f32 %v542_v17, %v125_v22  ;;  %v511_v19 = vshrl.u32 %v510_v18, 7 }
  0xc9   :  { %v599_v25 = vpop.f32.mrf.mxu1  ;;  %624 = vmatmul.mubr.msk.f32.vlgmr.msra.gmra.mxu1 %vm160_vm3, %v140_v23 }
  0xca   :  { %vm135_vm4 = vcmp.ge.f32.partialorder %v126_v24, 0.0  ;;  %v138_v26 = vmul.f32 0.01, %v126_v24  ;;  %626 = vmatprep.mubr.msk.f32.mxu1 %vm675_vm1, %v674_v0 }
  0xcb   :  { %v130_v27 = vpop.f32.mrf.mxu1 }
  0xcc   :  { %v131_v28 = vadd.f32 %v542_v17, %v130_v27  ;;  %v141_v29 = vsel %vm135_vm4, %v126_v24, %v138_v26 }
  0xcd   :  { %v602_v30 = vpop.f32.mrf.mxu1  ;;  %627 = vmatmul.mubr.msk.f32.gmra.mxu1 %vm160_vm3, %v141_v29 }
  0xce   :  { %vm136_vm5 = vcmp.ge.f32.partialorder %v131_v28, 0.0  ;;  %v139_v31 = vmul.f32 0.01, %v131_v28  ;;  %629 = vmatprep.mubr.msk.f32.mxu1 %vm675_vm1, %v674_v0 }
  0xd0   :  { %v142_v32 = vsel %vm136_vm5, %v131_v28, %v139_v31 }
  0xd1   :  { %630 = vmatmul.mubr.msk.f32.gmra.mxu1 %vm160_vm3, %v142_v32 }
 0x189   :  { %v236_v37 = vpop.f32.mrf.mxu1 }
 0x18a   :  { %v237_v38 = vadd.f32 %v546_v36, %v236_v37 }
 0x18b   :  { %v625_v39 = vpop.f32.mrf.mxu1 }
 0x18c   :  { %vm250_vm6 = vcmp.ge.f32.partialorder %v237_v38, 0.0  ;;  %v253_v40 = vmul.f32 0.01, %v237_v38 }
 0x18d   :  { %v241_v41 = vpop.f32.mrf.mxu1 }
 0x18e   :  { %v242_v42 = vadd.f32 %v546_v36, %v241_v41  ;;  %v256_v43 = vsel %vm250_vm6, %v237_v38, %v253_v40  ;;  %v530_v40 = vstv %s876_s8 }
 0x18f   :  { %v628_v44 = vpop.f32.mrf.mxu1  ;;  %643 = vmatmul.mubr.msk.f32.vlgmr.msra.gmra.mxu0 %vm271_vm7, %v256_v43 }
 0x190   :  { %vm251_vm8 = vcmp.ge.f32.partialorder %v242_v42, 0.0  ;;  %v254_v45 = vmul.f32 0.01, %v242_v42  ;;  %645 = vmatprep.mubr.msk.f32.mxu0 %vm675_vm1, %v674_v0 }
 0x191   :  { %v246_v46 = vpop.f32.mrf.mxu1 }
 0x192   :  { %v247_v47 = vadd.f32 %v546_v36, %v246_v46  ;;  %v257_v48 = vsel %vm251_vm8, %v242_v42, %v254_v45 }
 0x193   :  { %v631_v49 = vpop.f32.mrf.mxu1  ;;  %646 = vmatmul.mubr.msk.f32.gmra.mxu0 %vm271_vm7, %v257_v48 }
 0x194   :  { %vm252_vm9 = vcmp.ge.f32.partialorder %v247_v47, 0.0  ;;  %v255_v50 = vmul.f32 0.01, %v247_v47  ;;  %648 = vmatprep.mubr.msk.f32.mxu0 %vm675_vm1, %v674_v0 }
 0x196   :  { %v258_v51 = vsel %vm252_vm9, %v247_v47, %v255_v50 }
 0x197   :  { %649 = vmatmul.mubr.msk.f32.gmra.mxu0 %vm271_vm7, %v258_v51 }
 0x198   :  { %657 = vmatprep.mubr.msk.f32.mxu0 %vm675_vm1, %v674_v0 }
 0x24f   :  { %v347_v53 = vpop.f32.mrf.mxu0 }
 0x250   :  { %v348_v55 = vadd.f32 %v550_v52, %v347_v53 }
 0x251   :  { %v644_v56 = vpop.f32.mrf.mxu0 }
 0x252   :  { %v368_v57 = vmul.f32 %v554_v54, %v348_v55 }
 0x253   :  { %v352_v58 = vpop.f32.mrf.mxu0 }
 0x254   :  { %v353_v59 = vadd.f32 %v550_v52, %v352_v58  ;;  %v371_v60 = vmul.f32 %v368_v57, %v368_v57 }
 0x255   :  { %v647_v61 = vpop.f32.mrf.mxu0 }
 0x256   :  { %v369_v62 = vmul.f32 %v554_v54, %v353_v59  ;;  %v374_v63 = vsel %vm44_vm0, %v371_v60, 0.0 }
 0x257   :  { %375 = vadd.xlane.f32.xlu0 %v374_v63  ;;  %v357_v1 = vpop.f32.mrf.mxu0 }
 0x258   :  { %v358_v2 = vadd.f32 %v550_v52, %v357_v1  ;;  %v372_v3 = vmul.f32 %v369_v62, %v369_v62 }
 0x259   :  { %v650_v4 = vpop.f32.mrf.mxu0 }
 0x25a   :  { %v370_v5 = vmul.f32 %v554_v54, %v358_v2  ;;  %v377_v6 = vsel %vm44_vm0, %v372_v3, 0.0 }
 0x25b   :  { %378 = vadd.xlane.f32.xlu0 %v377_v6 }
 0x25c   :  { %652 = vmatpush3.xpose.msk.msra.mxu0 %vm44_vm0, %v370_v5  ;;  %v373_v7 = vmul.f32 %v370_v5, %v370_v5 }
 0x25d   :  { %653 = vmatprep.subr.mxu0 %v674_v0 }
 0x25e   :  { %v380_v8 = vsel %vm44_vm0, %v373_v7, 0.0 }
 0x25f   :  { %381 = vadd.xlane.f32.xlu1 %v380_v8 }
 0x260   :  { %654 = vmatpush3.xpose.msk.msra.mxu0 %vm44_vm0, %v369_v62 }
 0x261   :  { %655 = vmatprep.subr.mxu0 %v674_v0 }
 0x264   :  { %656 = vmatpush3.xpose.msk.msra.mxu0 %vm44_vm0, %v368_v57 }
 0x267   :  { %658 = vmatmul.mubr.msk.f32.vlgmr.msra.gmra.mxu0 %vm44_vm0, %v368_v57 }
 0x268   :  { %660 = vmatprep.mubr.msk.f32.mxu0 %vm675_vm1, %v674_v0 }
 0x26b   :  { %661 = vmatmul.mubr.msk.f32.gmra.mxu0 %vm44_vm0, %v369_v62 }
 0x26c   :  { %663 = vmatprep.mubr.msk.f32.mxu0 %vm675_vm1, %v674_v0  ;;  %v512_v0 = vsub.s32 0, %v511_v19 }
 0x26f   :  { %664 = vmatmul.mubr.msk.f32.gmra.mxu0 %vm44_vm0, %v370_v5 }
 0x2e0   :  { %v376_v9 = vpop.xlane.xlu0 %375 }
 0x2e1   :  { %478 = vxpose.xlu1.b32.start [1/3] (short) (narrow) %v376_v9, 8 }
 0x2e4   :  { %v379_v10 = vpop.xlane.xlu0 %378 }
 0x2e5   :  { %479 = vxpose.xlu1.b32.cont [2/3] (short) (narrow) %v379_v10, 8 }
 0x2e8   :  { %v382_v11 = vpop.xlane.xlu1 %381 }
 0x2e9   :  { %480 = vxpose.xlu1.b32.end [3/3] (short) (narrow) %v382_v11, 8 }
 0x327   :  { %v458_v12 = vpop.f32.mrf.mxu0 }
 0x328   :  { %v472_v20 = vmul.f32 2.0, %v458_v12 }
 0x329   :  { %v659_v13 = vpop.f32.mrf.mxu0 }
 0x32a   :  { %v475_v24 = vsub.f32 %v376_v9, %v472_v20 }
 0x32b   :  { %v463_v14 = vpop.f32.mrf.mxu0 }
 0x32c   :  { %v473_v21 = vmul.f32 2.0, %v463_v14 }
 0x32d   :  { %v662_v15 = vpop.f32.mrf.mxu0 }
 0x32e   :  { %v476_v25 = vsub.f32 %v379_v10, %v473_v21 }
 0x32f   :  { %v468_v16 = vpop.f32.mrf.mxu0 }
 0x330   :  { %v474_v22 = vmul.f32 2.0, %v468_v16 }
 0x331   :  { %v665_v17 = vpop.f32.mrf.mxu0 }
 0x332   :  { %v477_v26 = vsub.f32 %v382_v11, %v474_v22 }
 0x35d   :  { %v494_v23 = vpop.trf.xlu1 }
 0x35e   :  { %v513_v27 = vrot.slane %v494_v23, %v512_v0 }
 0x360   :  { %v514_v28 = vadd.f32 %v513_v27, %v475_v24  ;;  %v515_v29 = vadd.f32 %v513_v27, %v476_v25  ;;  %v516_v30 = vadd.f32 %v513_v27, %v477_v26 }
 0x362   :  { %v517_v31 = vmax.f32 %v514_v28, 0.0  ;;  %v518_v32 = vmax.f32 %v515_v29, 0.0  ;;  %v519_v33 = vmax.f32 %v516_v30, 0.0 }
 0x364   :  { %v521_v34 = vmul.f32 -0.5, %v517_v31  ;;  %v522_v35 = vmul.f32 -0.5, %v518_v32  ;;  %v523_v36 = vmul.f32 -0.5, %v519_v33 }
 0x366   :  { %v524_v37 = vmul.f32 1.442695, %v521_v34  ;;  %v526_v38 = vmul.f32 1.442695, %v522_v35  ;;  %v528_v39 = vmul.f32 1.442695, %v523_v36 }
 0x368   :  { %668 = vpow2.f32 %v524_v37 }
 0x369   :  { %670 = vpow2.f32 %v526_v38 }
 0x36a   :  { %672 = vpow2.f32 %v528_v39 }
 0x375   :  { %v669_v41 = vpop.eup %668 }
 0x376   :  { %v671_v42 = vpop.eup %670  ;;  %v531_v43 = vmul.f32 %v669_v41, %v530_v40 }
 0x377   :  { %v673_v44 = vpop.eup %672  ;;  %v532_v45 = vmul.f32 %v671_v42, %v530_v40 }
 0x378   :  { %v533_v46 = vmul.f32 %v673_v44, %v530_v40  ;;  %535 = vst.msk [vmem:[%s877_s9] sm:$0xff] %vm534_vm10, %v531_v43 }
 0x379   :  { %536 = vst.msk [vmem:[%s877_s9 + $0x8] sm:$0xff] %vm534_vm10, %v532_v45 }
 0x37a   :  { %537 = vst.msk [vmem:[%s877_s9 + $0x10] sm:$0xff] %vm534_vm10, %v533_v46 }

</bundles_post_ra>
